<compile_context>
chip_gen: v6e
topology: v6e:2x2x1
jax: 0.10.0
libtpu: 0.0.40
codegen_flags: <defaults>
</compile_context>

<pallas_src>
import functools
import math

import jax
import jax.numpy as jnp
from jax.experimental import pallas as pl
from jax.experimental.pallas import tpu as pltpu


_SMALL_BYTES = 256 * 1024                   # below this: one block, no pipelining
_TARGET_BLOCK_BYTES = 8 * 1024 * 1024       # per-block target for tiled paths
# 8 MiB blocks, double-buffered in + out (4x) plus ~1 block transpose temp
# ~= 40 MiB live VMEM: safe on v7x (64 MiB/TC) and v5e/v6e (128 MiB).
_VMEM_LIMIT_BYTES = 48 * 1024 * 1024
_GENERIC_SINGLE_BLOCK_BYTES = 16 * 1024 * 1024   # guard for whole-array fallback


def _grouped_swap(perm):
    """Detect perm == (0..p-1, k..m-1, p..k-1, m..n-1): a fixed prefix, two
    contiguous axis groups that swap, and a fixed minor suffix.
    Returns (p, k, m) or None."""
    n = len(perm)
    p = 0
    while p < n and perm[p] == p:
        p += 1
    if p == n:
        return None                      # identity
    t = 0
    while t < n - p and perm[n - 1 - t] == n - 1 - t:
        t += 1
    m = n - t
    k = perm[p]
    if not (p < k < m):
        return None
    expected = (tuple(range(p)) + tuple(range(k, m))
                + tuple(range(p, k)) + tuple(range(m, n)))
    return (p, k, m) if perm == expected else None


def _tile_lane(dim, cap):
    """Tile length legal in BOTH sublane and lane positions: full dim, or a
    multiple of 128 (<= cap)."""
    if dim <= cap or dim < 128:
        return dim
    return max(128, (min(dim, cap) // 128) * 128)


def _tile_sublane(dim, cap):
    """Tile length legal in a sublane (second-to-last) position: full dim, or
    a multiple of 8 (floored at 8)."""
    if dim <= cap or dim < 8:
        return dim
    return max(8, (min(dim, cap) // 8) * 8)


def _params(n_axes):
    return pltpu.CompilerParams(
        dimension_semantics=("parallel",) * n_axes,
        vmem_limit_bytes=_VMEM_LIMIT_BYTES)


# ---------------------------------------------------------------------------
# Kernels
# ---------------------------------------------------------------------------
def _swap3_kernel(x_ref, o_ref):
    # (lb, ta, tb) -> (lb, tb, ta): batched minor transpose; the index maps
    # already did the coarse (i, j) -> (j, i) swap via DMA.
    o_ref[...] = jnp.transpose(x_ref[...], (0, 2, 1))


def _swap3_flat_kernel(x_ref, o_ref):
    # (lb, A, B) -> (lb, B*A): transpose then flatten so the writeback is a
    # full-lane, unmasked store even when A < 128 (e.g. NCHW -> NHWC with few
    # channels).  Used only when A is not already lane-dense.
    lb, a, b = x_ref.shape
    o_ref[...] = jnp.transpose(x_ref[...], (0, 2, 1)).reshape(lb, b * a)


def _swap4_kernel(x_ref, o_ref):
    # (lb, ta, tb, tc) -> (lb, tb, ta, tc): group swap with a fixed minor
    # suffix kept in the lane dim (no in-kernel relayout of the minor dim).
    o_ref[...] = jnp.transpose(x_ref[...], (0, 2, 1, 3))


def _generic_permute_kernel(perm, x_ref, o_ref):
    # Fallback for permutations that are not a single grouped swap.
    o_ref[...] = jnp.transpose(x_ref[...], perm)


# ---------------------------------------------------------------------------
# Wrapper
# ---------------------------------------------------------------------------
def permute_pallas(x: jax.Array, perm) -> jax.Array:
    """Pallas equivalent of torch.Tensor.permute(*perm)."""
    n = x.ndim
    perm = tuple(int(p) % n for p in perm)
    assert sorted(perm) == list(range(n)), "invalid permutation"
    out_shape = tuple(x.shape[p] for p in perm)

    if perm == tuple(range(n)):
        return x                          # identity: nothing to move

    itemsize = x.dtype.itemsize
    total_bytes = x.size * itemsize
    cost = pl.CostEstimate(flops=0, transcendentals=0,
                           bytes_accessed=2 * total_bytes)

    gs = _grouped_swap(perm)
    if gs is not None:
        p, k, m = gs
        L = math.prod(x.shape[:p])        # leading axes that stay in place
        A = math.prod(x.shape[p:k])       # group that moves to the minor side
        B = math.prod(x.shape[k:m])       # group that moves to the major side
        C = math.prod(x.shape[m:])        # fixed minor suffix (1 if absent)

        # TODO(synk): for 16-bit dtypes with even minor group size, pack pairs
        # to uint32 via pltpu.bitcast to halve the XLU relayout work.

        if C == 1:
            x3 = x.reshape(L, A, B)       # free collapse of contiguous dims

            if total_bytes <= _SMALL_BYTES:
                # Truly tiny: one block, batched minor transpose, no relayout.
                out = pl.pallas_call(
                    _swap3_kernel,
                    out_shape=jax.ShapeDtypeStruct((L, B, A), x.dtype),
                    grid=(1,),
                    in_specs=[pl.BlockSpec((L, A, B), lambda i: (0, 0, 0))],
                    out_specs=pl.BlockSpec((L, B, A), lambda i: (0, 0, 0)),
                    cost_estimate=cost,
                    compiler_params=_params(1),
                )(x3)
                return out.reshape(out_shape)

            row_slab = A * B * itemsize

            if A % 128 == 0 and L > 1 and row_slab <= _TARGET_BLOCK_BYTES:
                # Output minor dim already lane-dense: tile only over L with
                # the whole (A, B) slab per row; no in-kernel reshape.
                lb = min(L, max(1, _TARGET_BLOCK_BYTES // row_slab))
                if lb >= L and L >= 2:
                    lb = pl.cdiv(L, 2)    # megacore: keep >= 2 grid steps
                out = pl.pallas_call(
                    _swap3_kernel,
                    out_shape=jax.ShapeDtypeStruct((L, B, A), x.dtype),
                    grid=(pl.cdiv(L, lb),),
                    in_specs=[pl.BlockSpec((lb, A, B), lambda l: (l, 0, 0))],
                    out_specs=pl.BlockSpec((lb, B, A), lambda l: (l, 0, 0)),
                    cost_estimate=cost,
                    compiler_params=_params(1),
                )(x3)
                return out.reshape(out_shape)

            if (A % 128 != 0 and L > 1
                    and _TARGET_BLOCK_BYTES // row_slab >= 8):
                # A not lane-dense: flatten the output inside the kernel so
                # stores stay full-lane.  The L-block (sublane dim of the flat
                # output) must be a multiple of 8 or the full L - never 1..7.
                lb = (min(L, _TARGET_BLOCK_BYTES // row_slab) // 8) * 8
                if lb == 0:
                    lb = L                # L < 8: take all of L in one block
                elif lb >= L:
                    # megacore: split into >= 2 steps when L is big enough
                    lb = L if L < 16 else max(8, ((L // 2) // 8) * 8)
                flat = pl.pallas_call(
                    _swap3_flat_kernel,
                    out_shape=jax.ShapeDtypeStruct((L, B * A), x.dtype),
                    grid=(pl.cdiv(L, lb),),
                    in_specs=[pl.BlockSpec((lb, A, B), lambda l: (l, 0, 0))],
                    out_specs=pl.BlockSpec((lb, B * A), lambda l: (l, 0)),
                    cost_estimate=cost,
                    compiler_params=_params(1),
                )(x3)
                return flat.reshape(out_shape)

            # General tiled path: the (A, B) slab per row is too big (or L==1).
            # Tile L, A and B; index maps carry the coarse swap via DMA, the
            # kernel only transposes one tile.  Tiles are multiples of 128 (or
            # the full dim) so boundary blocks stay legal.
            ta = _tile_lane(A, 1024)      # output's last dim: keep it wide
            tb = _tile_lane(B, 1024)
            lb = min(L, max(1, _TARGET_BLOCK_BYTES // max(ta * tb * itemsize, 1)))
            out = pl.pallas_call(
                _swap3_kernel,
                out_shape=jax.ShapeDtypeStruct((L, B, A), x.dtype),
                grid=(pl.cdiv(L, lb), pl.cdiv(A, ta), pl.cdiv(B, tb)),
                in_specs=[pl.BlockSpec((lb, ta, tb),
                                       lambda l, i, j: (l, i, j))],
                out_specs=pl.BlockSpec((lb, tb, ta),
                                       lambda l, i, j: (l, j, i)),
                cost_estimate=cost,
                compiler_params=_params(3),
            )(x3)
            return out.reshape(out_shape)

        # C > 1: prefix + swapped groups + fixed minor suffix (e.g. (0,2,1,3)).
        x4 = x.reshape(L, A, B, C)

        if total_bytes <= _SMALL_BYTES:
            out = pl.pallas_call(
                _swap4_kernel,
                out_shape=jax.ShapeDtypeStruct((L, B, A, C), x.dtype),
                grid=(1,),
                in_specs=[pl.BlockSpec((L, A, B, C),
                                       lambda i: (0, 0, 0, 0))],
                out_specs=pl.BlockSpec((L, B, A, C),
                                       lambda i: (0, 0, 0, 0)),
                cost_estimate=cost,
                compiler_params=_params(1),
            )(x4)
            return out.reshape(out_shape)

        # Large: tile all four axes.  C stays the lane dim of both blocks (full
        # dim or a multiple of 128); A and B tiles are multiples of 8 (or the
        # full dim) since each sits in a sublane position on one side.
        tc = _tile_lane(C, 2048)
        inner = tc * itemsize
        tb = _tile_sublane(B, max(8, _TARGET_BLOCK_BYTES // inner))
        rem = max(8, _TARGET_BLOCK_BYTES // max(tb * inner, 1))
        ta = _tile_sublane(A, rem)
        lb = min(L, max(1, _TARGET_BLOCK_BYTES // max(ta * tb * inner, 1)))
        out = pl.pallas_call(
            _swap4_kernel,
            out_shape=jax.ShapeDtypeStruct((L, B, A, C), x.dtype),
            grid=(pl.cdiv(L, lb), pl.cdiv(A, ta), pl.cdiv(B, tb), pl.cdiv(C, tc)),
            in_specs=[pl.BlockSpec((lb, ta, tb, tc),
                                   lambda l, i, j, c: (l, i, j, c))],
            out_specs=pl.BlockSpec((lb, tb, ta, tc),
                                   lambda l, i, j, c: (l, j, i, c)),
            cost_estimate=cost,
            compiler_params=_params(4),
        )(x4)
        return out.reshape(out_shape)

    # ---- General permutation that is not a single grouped swap ----
    kernel = functools.partial(_generic_permute_kernel, perm)
    a0 = perm[0]
    if (3 * total_bytes > _GENERIC_SINGLE_BLOCK_BYTES
            and n >= 3 and a0 <= n - 3 and x.shape[a0] > 1):
        # VMEM guard: too big for a single block.  Tile over the output's
        # leading axis (input axis a0, which is not one of the input's last two
        # dims, so all block minor dims stay full and legal).
        in_block = tuple(1 if d == a0 else x.shape[d] for d in range(n))
        out_block = (1,) + out_shape[1:]

        def in_map(i, _a0=a0, _n=n):
            return tuple(i if d == _a0 else 0 for d in range(_n))

        def out_map(i, _n=n):
            return (i,) + (0,) * (_n - 1)

        return pl.pallas_call(
            kernel,
            out_shape=jax.ShapeDtypeStruct(out_shape, x.dtype),
            grid=(x.shape[a0],),
            in_specs=[pl.BlockSpec(in_block, in_map)],
            out_specs=pl.BlockSpec(out_block, out_map),
            cost_estimate=cost,
            compiler_params=_params(1),
        )(x)

    # Small / awkward generic permutation: whole-array single block.
    # TODO(synk): decompose arbitrary large permutations into successive
    # grouped swaps so they get a tiled, pipelined path too.
    return pl.pallas_call(
        kernel,
        out_shape=jax.ShapeDtypeStruct(out_shape, x.dtype),
        grid=(1,),
        in_specs=[pl.BlockSpec(x.shape, lambda i: (0,) * n)],
        out_specs=pl.BlockSpec(out_shape, lambda i: (0,) * n),
        cost_estimate=cost,
        compiler_params=_params(1),
    )(x)


class Permute:
    """Mirror of the PyTorch module: stores the permutation, applies it on call."""

    def __init__(self, *args):
        if len(args) == 1 and isinstance(args[0], (tuple, list)):
            args = tuple(args[0])
        self.permute = args

    def __call__(self, x):
        return permute_pallas(x, self.permute)


if __name__ == "__main__":
    key = jax.random.PRNGKey(0)
    x = jax.random.normal(key, (2, 4, 16, 16), dtype=jnp.float32)

    # NCHW -> NHWC (grouped swap, C == 1 path).
    y = jax.block_until_ready(Permute(0, 2, 3, 1)(x))
    ref = jnp.transpose(x, (0, 2, 3, 1))
    assert y.shape == ref.shape, (y.shape, ref.shape)
    assert y.dtype == ref.dtype
    assert bool(jnp.array_equal(y, ref))

    # Axis-0-moving permutation, still a grouped swap: (B,C,H,W) -> (H,W,B,C).
    y2 = jax.block_until_ready(Permute(2, 3, 0, 1)(x))
    assert bool(jnp.array_equal(y2, jnp.transpose(x, (2, 3, 0, 1))))

    # Grouped swap with a fixed minor suffix (attention-style head swap).
    y3 = jax.block_until_ready(Permute(0, 2, 1, 3)(x))
    assert bool(jnp.array_equal(y3, jnp.transpose(x, (0, 2, 1, 3))))

    # Not a single grouped swap -> generic fallback path.
    y4 = jax.block_until_ready(Permute(0, 3, 2, 1)(x))
    assert bool(jnp.array_equal(y4, jnp.transpose(x, (0, 3, 2, 1))))

    print("KERNEL_OK")
</pallas_src>

<mosaic_0001>
module attributes {stable_mosaic.version = 11 : i64} {
  func.func @_swap3_kernel(%arg0: i32, %arg1: memref<2x4x256xf32, #tpu.memory_space<vmem>>, %arg2: memref<2x256x4xf32, #tpu.memory_space<vmem>>) attributes {dimension_semantics = [#tpu.dimension_semantics<parallel>], iteration_bounds = array<i64: 1>, scalar_prefetch = 0 : i64, scratch_operands = 0 : i64, tpu.core_type = #tpu.core_type<tc>, window_params = [{pipeline_mode = #tpu.pipeline_mode<synchronous>, transform_indices = @transform_0, window_bounds = array<i64: 2, 4, 256>}, {pipeline_mode = #tpu.pipeline_mode<synchronous>, transform_indices = @transform_1, window_bounds = array<i64: 2, 256, 4>}]} {
    %c0 = arith.constant 0 : index
    %c0_0 = arith.constant 0 : index
    %c0_1 = arith.constant 0 : index
    %0 = vector.load %arg1[%c0, %c0_0, %c0_1] : memref<2x4x256xf32, #tpu.memory_space<vmem>>, vector<2x4x256xf32>
    %1 = tpu.transpose %0, [0, 2, 1] : vector<2x4x256xf32> -> vector<2x256x4xf32>
    %c0_2 = arith.constant 0 : index
    %c0_3 = arith.constant 0 : index
    %c0_4 = arith.constant 0 : index
    %2 = vector.load %arg2[%c0_2, %c0_3, %c0_4] : memref<2x256x4xf32, #tpu.memory_space<vmem>>, vector<2x256x4xf32>
    tpu.vector_store %arg2[%c0_2, %c0_3, %c0_4], %1 {strides = array<i32>} : memref<2x256x4xf32, #tpu.memory_space<vmem>>, vector<2x256x4xf32>,
    return
  }
  func.func @transform_0(%arg0: i32) -> (i32, i32, i32) {
    %c0_i32 = arith.constant 0 : i32
    %c0_i32_0 = arith.constant 0 : i32
    %c0_i32_1 = arith.constant 0 : i32
    %c0_i32_2 = arith.constant 0 : i32
    return %c0_i32, %c0_i32_0, %c0_i32_1 : i32, i32, i32
  }
  func.func @transform_1(%arg0: i32) -> (i32, i32, i32) {
    %c0_i32 = arith.constant 0 : i32
    %c0_i32_0 = arith.constant 0 : i32
    %c0_i32_1 = arith.constant 0 : i32
    %c0_i32_2 = arith.constant 0 : i32
    return %c0_i32, %c0_i32_0, %c0_i32_1 : i32, i32, i32
  }
}

</mosaic_0001>

<bundles_post_ra>
// kernel: tpu_custom_call.1
= control target key start
LH: loop header
LB: loop body
LE: loop exit
PB: predicated region body
PF: predicated region fallthrough
CT: control target
= control target key end

     0   :  { %6 = vsyncpa [#allocation3], 0  ;;  %s256_s6 = smov [#allocation2]   ;;  %s528_s0 = inlined_call_operand.hbm [shape: f32[2,4,256], index: 0, kind: input, shape index: {}]   ;;  %s529_s1 = inlined_call_operand.vmem [shape: f32[2,256,4], index: 1, kind: output, shape index: {}]  }
   0x1   :  { %s12_s7 = sshll.u32 %s256_s6, 4  ;;  %s13_s7 = int_to_ptr.vmem [resolvable:$true] %s12_s7 }
   0x2   :  { %s242_s8 = scalar_lea.vmem %s13_s7, 256  ;;  %p247_p1 = scmp.lt.s32.totalorder %s13_s7, %s13_s7 }
   0x3   :  { %p243_p0 = scmp.ne.s32.totalorder %s13_s7, %s242_s8  ;;  %p248_p2 = scmp.lt.s32.totalorder %s242_s8, %s242_s8 }
   0x5   :  { %p249_p3 = por %p248_p2, %p247_p1 }
   0x7   :  { %p250_p4 = pnand %p249_p3, %p243_p0 }
   0x9   :  { %253 = shalt.err (!%p250_p4)
}
   0xa   :  { %s257_s9 = smov 128   ;;  %s258_s10 = smov 8  }
   0xb   :  { %18 = dma.hbm_to_vmem [thread:$0]  %s528_s0, 256, %s13_s7, [#allocation3], %s257_s9, %s257_s9, %s258_s10  }
   0xc   :  { %254 = dma.done.wait [#allocation3], 256  }
   0xd   :  { %255 = vsyncadd [#allocation3], 4294967040  ;;  %v23_v0 = vld [vmem:[#allocation2 + $0x8] sm:$0xff]  ;;  %v22_v1 = vld [vmem:[#allocation2] sm:$0xff]  ;;  %vm158_vm0 = vcmask 31744  }
   0xe   :  { %94 = vxpose.xlu1.b32.start.end [1/1] (short) %v23_v0, 128  ;;  %30 = vxpose.xlu0.b32.start.end [1/1] (short) %v22_v1, 128  ;;  %v27_v2 = vcombine.high %v23_v0, %v23_v0  ;;  %v26_v3 = vcombine.high %v22_v1, %v22_v1 }
  0x4b   :  { %126 = vxpose.xlu1.b32.start.end [1/1] (short) %v27_v2, 128  ;;  %62 = vxpose.xlu0.b32.start.end [1/1] (short) %v26_v3, 128 }
  0x8a   :  { %v110_v4 = vpop.trf.xlu1  ;;  %v46_v5 = vpop.trf.xlu0 }
  0x8b   :  { %191 = vst.msk [vmem:[%s529_s1 + $0x100] sm:$0xff] %vm158_vm0, %v110_v4  ;;  %159 = vst.msk [vmem:[%s529_s1] sm:$0xff] %vm158_vm0, %v46_v5 }
  0x8e   :  { %v111_v6 = vpop.trf.xlu1  ;;  %v47_v7 = vpop.trf.xlu0 }
  0x8f   :  { %192 = vst.msk [vmem:[%s529_s1 + $0x108] sm:$0xff] %vm158_vm0, %v111_v6  ;;  %160 = vst.msk [vmem:[%s529_s1 + $0x8] sm:$0xff] %vm158_vm0, %v47_v7 }
  0x92   :  { %v112_v8 = vpop.trf.xlu1  ;;  %v48_v9 = vpop.trf.xlu0 }
  0x93   :  { %193 = vst.msk [vmem:[%s529_s1 + $0x110] sm:$0xff] %vm158_vm0, %v112_v8  ;;  %161 = vst.msk [vmem:[%s529_s1 + $0x10] sm:$0xff] %vm158_vm0, %v48_v9 }
  0x96   :  { %v113_v10 = vpop.trf.xlu1  ;;  %v49_v11 = vpop.trf.xlu0 }
  0x97   :  { %194 = vst.msk [vmem:[%s529_s1 + $0x118] sm:$0xff] %vm158_vm0, %v113_v10  ;;  %162 = vst.msk [vmem:[%s529_s1 + $0x18] sm:$0xff] %vm158_vm0, %v49_v11 }
  0x9a   :  { %v114_v12 = vpop.trf.xlu1  ;;  %v50_v13 = vpop.trf.xlu0 }
  0x9b   :  { %195 = vst.msk [vmem:[%s529_s1 + $0x120] sm:$0xff] %vm158_vm0, %v114_v12  ;;  %163 = vst.msk [vmem:[%s529_s1 + $0x20] sm:$0xff] %vm158_vm0, %v50_v13 }
  0x9e   :  { %v115_v14 = vpop.trf.xlu1  ;;  %v51_v15 = vpop.trf.xlu0 }
  0x9f   :  { %196 = vst.msk [vmem:[%s529_s1 + $0x128] sm:$0xff] %vm158_vm0, %v115_v14  ;;  %164 = vst.msk [vmem:[%s529_s1 + $0x28] sm:$0xff] %vm158_vm0, %v51_v15 }
  0xa2   :  { %v116_v16 = vpop.trf.xlu1  ;;  %v52_v17 = vpop.trf.xlu0 }
  0xa3   :  { %197 = vst.msk [vmem:[%s529_s1 + $0x130] sm:$0xff] %vm158_vm0, %v116_v16  ;;  %165 = vst.msk [vmem:[%s529_s1 + $0x30] sm:$0xff] %vm158_vm0, %v52_v17 }
  0xa6   :  { %v117_v18 = vpop.trf.xlu1  ;;  %v53_v19 = vpop.trf.xlu0 }
  0xa7   :  { %198 = vst.msk [vmem:[%s529_s1 + $0x138] sm:$0xff] %vm158_vm0, %v117_v18  ;;  %166 = vst.msk [vmem:[%s529_s1 + $0x38] sm:$0xff] %vm158_vm0, %v53_v19 }
  0xaa   :  { %v118_v20 = vpop.trf.xlu1  ;;  %v54_v21 = vpop.trf.xlu0 }
  0xab   :  { %199 = vst.msk [vmem:[%s529_s1 + $0x140] sm:$0xff] %vm158_vm0, %v118_v20  ;;  %167 = vst.msk [vmem:[%s529_s1 + $0x40] sm:$0xff] %vm158_vm0, %v54_v21 }
  0xae   :  { %v119_v22 = vpop.trf.xlu1  ;;  %v55_v23 = vpop.trf.xlu0 }
  0xaf   :  { %200 = vst.msk [vmem:[%s529_s1 + $0x148] sm:$0xff] %vm158_vm0, %v119_v22  ;;  %168 = vst.msk [vmem:[%s529_s1 + $0x48] sm:$0xff] %vm158_vm0, %v55_v23 }
  0xb2   :  { %v120_v24 = vpop.trf.xlu1  ;;  %v56_v25 = vpop.trf.xlu0 }
  0xb3   :  { %201 = vst.msk [vmem:[%s529_s1 + $0x150] sm:$0xff] %vm158_vm0, %v120_v24  ;;  %169 = vst.msk [vmem:[%s529_s1 + $0x50] sm:$0xff] %vm158_vm0, %v56_v25 }
  0xb6   :  { %v121_v26 = vpop.trf.xlu1  ;;  %v57_v27 = vpop.trf.xlu0 }
  0xb7   :  { %202 = vst.msk [vmem:[%s529_s1 + $0x158] sm:$0xff] %vm158_vm0, %v121_v26  ;;  %170 = vst.msk [vmem:[%s529_s1 + $0x58] sm:$0xff] %vm158_vm0, %v57_v27 }
  0xba   :  { %v122_v28 = vpop.trf.xlu1  ;;  %v58_v29 = vpop.trf.xlu0 }
  0xbb   :  { %203 = vst.msk [vmem:[%s529_s1 + $0x160] sm:$0xff] %vm158_vm0, %v122_v28  ;;  %171 = vst.msk [vmem:[%s529_s1 + $0x60] sm:$0xff] %vm158_vm0, %v58_v29 }
  0xbe   :  { %v123_v30 = vpop.trf.xlu1  ;;  %v59_v31 = vpop.trf.xlu0 }
  0xbf   :  { %204 = vst.msk [vmem:[%s529_s1 + $0x168] sm:$0xff] %vm158_vm0, %v123_v30  ;;  %172 = vst.msk [vmem:[%s529_s1 + $0x68] sm:$0xff] %vm158_vm0, %v59_v31 }
  0xc2   :  { %v124_v32 = vpop.trf.xlu1  ;;  %v60_v33 = vpop.trf.xlu0 }
  0xc3   :  { %205 = vst.msk [vmem:[%s529_s1 + $0x170] sm:$0xff] %vm158_vm0, %v124_v32  ;;  %173 = vst.msk [vmem:[%s529_s1 + $0x70] sm:$0xff] %vm158_vm0, %v60_v33 }
  0xc6   :  { %v125_v34 = vpop.trf.xlu1  ;;  %v61_v35 = vpop.trf.xlu0 }
  0xc7   :  { %206 = vst.msk [vmem:[%s529_s1 + $0x178] sm:$0xff] %vm158_vm0, %v125_v34  ;;  %174 = vst.msk [vmem:[%s529_s1 + $0x78] sm:$0xff] %vm158_vm0, %v61_v35 }
  0xca   :  { %v142_v36 = vpop.trf.xlu1  ;;  %v78_v37 = vpop.trf.xlu0 }
  0xcb   :  { %207 = vst.msk [vmem:[%s529_s1 + $0x180] sm:$0xff] %vm158_vm0, %v142_v36  ;;  %175 = vst.msk [vmem:[%s529_s1 + $0x80] sm:$0xff] %vm158_vm0, %v78_v37 }
  0xce   :  { %v143_v38 = vpop.trf.xlu1  ;;  %v79_v39 = vpop.trf.xlu0 }
  0xcf   :  { %208 = vst.msk [vmem:[%s529_s1 + $0x188] sm:$0xff] %vm158_vm0, %v143_v38  ;;  %176 = vst.msk [vmem:[%s529_s1 + $0x88] sm:$0xff] %vm158_vm0, %v79_v39 }
  0xd2   :  { %v144_v40 = vpop.trf.xlu1  ;;  %v80_v41 = vpop.trf.xlu0 }
  0xd3   :  { %209 = vst.msk [vmem:[%s529_s1 + $0x190] sm:$0xff] %vm158_vm0, %v144_v40  ;;  %177 = vst.msk [vmem:[%s529_s1 + $0x90] sm:$0xff] %vm158_vm0, %v80_v41 }
  0xd6   :  { %v145_v42 = vpop.trf.xlu1  ;;  %v81_v43 = vpop.trf.xlu0 }
  0xd7   :  { %210 = vst.msk [vmem:[%s529_s1 + $0x198] sm:$0xff] %vm158_vm0, %v145_v42  ;;  %178 = vst.msk [vmem:[%s529_s1 + $0x98] sm:$0xff] %vm158_vm0, %v81_v43 }
  0xda   :  { %v146_v44 = vpop.trf.xlu1  ;;  %v82_v45 = vpop.trf.xlu0 }
  0xdb   :  { %211 = vst.msk [vmem:[%s529_s1 + $0x1a0] sm:$0xff] %vm158_vm0, %v146_v44  ;;  %179 = vst.msk [vmem:[%s529_s1 + $0xa0] sm:$0xff] %vm158_vm0, %v82_v45 }
  0xde   :  { %v147_v46 = vpop.trf.xlu1  ;;  %v83_v47 = vpop.trf.xlu0 }
  0xdf   :  { %212 = vst.msk [vmem:[%s529_s1 + $0x1a8] sm:$0xff] %vm158_vm0, %v147_v46  ;;  %180 = vst.msk [vmem:[%s529_s1 + $0xa8] sm:$0xff] %vm158_vm0, %v83_v47 }
  0xe2   :  { %v148_v48 = vpop.trf.xlu1  ;;  %v84_v49 = vpop.trf.xlu0 }
  0xe3   :  { %213 = vst.msk [vmem:[%s529_s1 + $0x1b0] sm:$0xff] %vm158_vm0, %v148_v48  ;;  %181 = vst.msk [vmem:[%s529_s1 + $0xb0] sm:$0xff] %vm158_vm0, %v84_v49 }
  0xe6   :  { %v149_v50 = vpop.trf.xlu1  ;;  %v85_v51 = vpop.trf.xlu0 }
  0xe7   :  { %214 = vst.msk [vmem:[%s529_s1 + $0x1b8] sm:$0xff] %vm158_vm0, %v149_v50  ;;  %182 = vst.msk [vmem:[%s529_s1 + $0xb8] sm:$0xff] %vm158_vm0, %v85_v51 }
  0xea   :  { %v150_v52 = vpop.trf.xlu1  ;;  %v86_v53 = vpop.trf.xlu0 }
  0xeb   :  { %215 = vst.msk [vmem:[%s529_s1 + $0x1c0] sm:$0xff] %vm158_vm0, %v150_v52  ;;  %183 = vst.msk [vmem:[%s529_s1 + $0xc0] sm:$0xff] %vm158_vm0, %v86_v53 }
  0xee   :  { %v151_v54 = vpop.trf.xlu1  ;;  %v87_v55 = vpop.trf.xlu0 }
  0xef   :  { %216 = vst.msk [vmem:[%s529_s1 + $0x1c8] sm:$0xff] %vm158_vm0, %v151_v54  ;;  %184 = vst.msk [vmem:[%s529_s1 + $0xc8] sm:$0xff] %vm158_vm0, %v87_v55 }
  0xf2   :  { %v152_v56 = vpop.trf.xlu1  ;;  %v88_v57 = vpop.trf.xlu0 }
  0xf3   :  { %217 = vst.msk [vmem:[%s529_s1 + $0x1d0] sm:$0xff] %vm158_vm0, %v152_v56  ;;  %185 = vst.msk [vmem:[%s529_s1 + $0xd0] sm:$0xff] %vm158_vm0, %v88_v57 }
  0xf6   :  { %v153_v58 = vpop.trf.xlu1  ;;  %v89_v59 = vpop.trf.xlu0 }
  0xf7   :  { %218 = vst.msk [vmem:[%s529_s1 + $0x1d8] sm:$0xff] %vm158_vm0, %v153_v58  ;;  %186 = vst.msk [vmem:[%s529_s1 + $0xd8] sm:$0xff] %vm158_vm0, %v89_v59 }
  0xfa   :  { %v154_v60 = vpop.trf.xlu1  ;;  %v90_v61 = vpop.trf.xlu0 }
  0xfb   :  { %219 = vst.msk [vmem:[%s529_s1 + $0x1e0] sm:$0xff] %vm158_vm0, %v154_v60  ;;  %187 = vst.msk [vmem:[%s529_s1 + $0xe0] sm:$0xff] %vm158_vm0, %v90_v61 }
  0xfe   :  { %v155_v62 = vpop.trf.xlu1  ;;  %v91_v63 = vpop.trf.xlu0 }
  0xff   :  { %220 = vst.msk [vmem:[%s529_s1 + $0x1e8] sm:$0xff] %vm158_vm0, %v155_v62  ;;  %188 = vst.msk [vmem:[%s529_s1 + $0xe8] sm:$0xff] %vm158_vm0, %v91_v63 }
 0x102   :  { %v156_v0 = vpop.trf.xlu1  ;;  %v92_v1 = vpop.trf.xlu0 }
 0x103   :  { %221 = vst.msk [vmem:[%s529_s1 + $0x1f0] sm:$0xff] %vm158_vm0, %v156_v0  ;;  %189 = vst.msk [vmem:[%s529_s1 + $0xf0] sm:$0xff] %vm158_vm0, %v92_v1 }
 0x106   :  { %v157_v2 = vpop.trf.xlu1  ;;  %v93_v3 = vpop.trf.xlu0 }
 0x107   :  { %222 = vst.msk [vmem:[%s529_s1 + $0x1f8] sm:$0xff] %vm158_vm0, %v157_v2  ;;  %190 = vst.msk [vmem:[%s529_s1 + $0xf8] sm:$0xff] %vm158_vm0, %v93_v3 }
 0x108   :  { %227 = vsyncpa [#allocation3], 1 }

</bundles_post_ra>
